<compile_context>
chip_gen: v7x
topology: tpu7x:2x2x1
jax: 0.10.0
libtpu: 0.0.40
codegen_flags: <defaults>
</compile_context>

<pallas_src>
import numpy as np
import jax
import jax.numpy as jnp
from jax.experimental import pallas as pl
from jax.experimental.pallas import tpu as pltpu


# --------------------------------------------------------------------------
# Pallas kernel: one TM-column batch tile per grid step (batch on lanes)
# --------------------------------------------------------------------------
def gaussian_policy_kernel(state_ref, action_ref,
                           w1_ref, b1_ref, w2_ref, b2_ref, w3_ref, b3_ref,
                           nhiv_ref, c_ref, out_ref):
    cdt = w1_ref.dtype                                   # compute dtype (f32 or bf16)

    x = state_ref[...].astype(cdt)                                      # (S, TM)

    # fc1 -> tanh            (W1 @ X, PyTorch (out, in) weight layout)
    z1 = jnp.dot(w1_ref[...], x, preferred_element_type=jnp.float32) + b1_ref[...]
    h1 = jnp.tanh(z1.astype(cdt))                                       # (F1, TM)

    # fc2 -> tanh
    z2 = jnp.dot(w2_ref[...], h1, preferred_element_type=jnp.float32) + b2_ref[...]
    h2 = jnp.tanh(z2.astype(cdt))                                       # (F2, TM)

    # fc3 -> 2.5 * sigmoid   (kept in f32: saturating head + log-prob math)
    z3 = jnp.dot(w3_ref[...], h2, preferred_element_type=jnp.float32) + b3_ref[...]
    mu = 2.5 * jax.nn.sigmoid(z3)                                       # (A, TM), f32

    # Gaussian log-prob, no divides:
    #   log N(a; mu, std) = -(a-mu)^2 * (0.5/var)  - log_std - 0.5*log(2*pi)
    diff = action_ref[...].astype(jnp.float32) - mu                     # (A, TM)
    dd = diff * diff

    # Weighted reduction over the action dim: (1, A) @ (A, TM) -> lane-dense
    # (1, TM) row of  sum_j (-0.5/var_j) * diff_j^2 .
    lp_row = jnp.dot(nhiv_ref[...], dd, preferred_element_type=jnp.float32)

    out_ref[...] = lp_row + c_ref[0, 0]                                 # scalar C from SMEM


# --------------------------------------------------------------------------
# Wrapper
# --------------------------------------------------------------------------
def _round_up(x, m):
    return (x + m - 1) // m * m


def evaluate_action_pallas(state, action, params, *,
                           tile_m=8192, compute_dtype=jnp.float32):
    """state: (T, state_dim), action: (T, action_dim) -> log_prob (T,) float32.

    tile_m: max batch columns per grid step (rounded to a multiple of 128).
            Large tiles amortize the ~0.35 us grid-step overhead; VMEM use is
            tiny even at 8192.  The tile is additionally clamped so the grid
            has >= 2 steps when T allows it (keeps both TensorCores busy on
            2-core chips).
    compute_dtype: jnp.float32 (v5e) or jnp.bfloat16 (v6e/v7x) for the MLP
            matmuls/activations; accumulation & log-prob math are always f32.
    """
    T, S = state.shape
    A = action.shape[1]
    w1, b1, w2, b2, w3, b3, log_std = params            # PyTorch (out, in) layout
    F1 = w1.shape[0]
    F2 = w2.shape[0]

    # Batch-on-lanes: transpose the two streaming arrays once in the wrapper.
    state_t = state.T                                    # (S, T)
    action_t = action.T                                  # (A, T)

    # Tile: multiple of 128 lanes; keep grid >= 2 when T is large enough.
    tm = max(128, min(_round_up(int(tile_m), 128), _round_up(-(-T // 2), 128)))
    grid = pl.cdiv(T, tm)

    # Log-prob constants, computed once outside the grid.
    nhiv = (-0.5 * jnp.exp(-2.0 * log_std)).reshape(1, A).astype(jnp.float32)
    c = (-jnp.sum(log_std) - 0.5 * A * np.log(2.0 * np.pi))
    c = c.reshape(1, 1).astype(jnp.float32)

    def stream(rows):                      # streams over the T grid axis (lanes)
        return pl.BlockSpec((rows, tm), lambda i: (0, i))

    def resident(rows, cols):              # constant index_map -> DMA'd once
        return pl.BlockSpec((rows, cols), lambda i: (0, 0))

    out = pl.pallas_call(
        gaussian_policy_kernel,
        grid=(grid,),
        in_specs=[
            stream(S),                                        # state^T tile
            stream(A),                                        # action^T tile
            resident(F1, S),                                  # w1 (out, in)
            resident(F1, 1),                                  # b1
            resident(F2, F1),                                 # w2
            resident(F2, 1),                                  # b2
            resident(A, F2),                                  # w3
            resident(A, 1),                                   # b3
            resident(1, A),                                   # -0.5 / var
            pl.BlockSpec(memory_space=pltpu.MemorySpace.SMEM),  # scalar C
        ],
        # Lane-dense output: one (1, tm) row per grid step.  Logical output is
        # padded to grid*tm columns so blocks divide evenly; the ragged input
        # tail computes garbage lanes that are sliced off below.
        out_specs=pl.BlockSpec((1, tm), lambda i: (0, i)),
        out_shape=jax.ShapeDtypeStruct((1, grid * tm), jnp.float32),
        compiler_params=pltpu.CompilerParams(
            dimension_semantics=("parallel",)),
    )(state_t, action_t,
      w1.astype(compute_dtype), b1.reshape(F1, 1).astype(jnp.float32),
      w2.astype(compute_dtype), b2.reshape(F2, 1).astype(jnp.float32),
      w3.astype(compute_dtype), b3.reshape(A, 1).astype(jnp.float32),
      nhiv, c)

    return out.reshape(-1)[:T]


# --------------------------------------------------------------------------
# Deterministic parameter init (mirrors nn.init.orthogonal_(gain=sqrt(2)),
# zero biases, log_std = -0.5 * ones(action_dim)).  Weights stay in PyTorch
# (out, in) layout -- the kernel computes W @ X directly.
# --------------------------------------------------------------------------
def orthogonal_init(key, out_dim, in_dim, gain):
    rows, cols = out_dim, in_dim
    flat = jax.random.normal(key, (max(rows, cols), min(rows, cols)), jnp.float32)
    q, r = jnp.linalg.qr(flat)
    q = q * jnp.sign(jnp.diag(r))        # deterministic-sign orthogonal
    if rows < cols:
        q = q.T
    return gain * q[:rows, :cols]        # PyTorch layout: (out, in)


def make_params(state_dim, fc1_dim, fc2_dim, action_dim, key):
    k1, k2, k3 = jax.random.split(key, 3)
    g = np.sqrt(2.0)
    w1 = orthogonal_init(k1, fc1_dim, state_dim, g)     # (fc1, S)
    w2 = orthogonal_init(k2, fc2_dim, fc1_dim, g)       # (fc2, fc1)
    w3 = orthogonal_init(k3, action_dim, fc2_dim, g)    # (A, fc2)
    b1 = jnp.zeros((fc1_dim,), jnp.float32)
    b2 = jnp.zeros((fc2_dim,), jnp.float32)
    b3 = jnp.zeros((action_dim,), jnp.float32)
    log_std = -0.5 * jnp.ones((action_dim,), jnp.float32)
    return (w1, b1, w2, b2, w3, b3, log_std)


# --------------------------------------------------------------------------
# Pure-JAX reference (matches torch.distributions.Normal.log_prob)
# --------------------------------------------------------------------------
def evaluate_action_ref(state, action, params):
    w1, b1, w2, b2, w3, b3, log_std = params
    h1 = jnp.tanh(state @ w1.T + b1)
    h2 = jnp.tanh(h1 @ w2.T + b2)
    mu = 2.5 * jax.nn.sigmoid(h2 @ w3.T + b3)
    std = jnp.exp(log_std)
    lp = (-((action - mu) ** 2) / (2.0 * std * std)
          - log_std - 0.5 * jnp.log(2.0 * jnp.pi))
    return lp.sum(axis=1)


if __name__ == "__main__":
    # small shapes implied by the module: state_dim, fc1, fc2, action_dim, T
    state_dim, fc1_dim, fc2_dim, action_dim, T = 8, 32, 32, 4, 20

    key = jax.random.PRNGKey(0)
    kp, ks, ka = jax.random.split(key, 3)

    params = make_params(state_dim, fc1_dim, fc2_dim, action_dim, kp)
    state = jax.random.normal(ks, (T, state_dim), jnp.float32)
    action = jax.random.normal(ka, (T, action_dim), jnp.float32)

    ref = evaluate_action_ref(state, action, params)

    # f32 path, single (ragged) tile
    lp = jax.block_until_ready(evaluate_action_pallas(state, action, params))
    np.testing.assert_allclose(np.asarray(lp), np.asarray(ref),
                               rtol=1e-5, atol=1e-5)

    # f32 path, larger batch with a small tile -> exercises multi-step grid
    # plus a ragged final tile (no jnp.pad anywhere).
    T2 = 300
    ks2, ka2 = jax.random.split(jax.random.PRNGKey(1), 2)
    state2 = jax.random.normal(ks2, (T2, state_dim), jnp.float32)
    action2 = jax.random.normal(ka2, (T2, action_dim), jnp.float32)
    ref2 = evaluate_action_ref(state2, action2, params)
    lp_tiled = jax.block_until_ready(
        evaluate_action_pallas(state2, action2, params, tile_m=128))
    np.testing.assert_allclose(np.asarray(lp_tiled), np.asarray(ref2),
                               rtol=1e-5, atol=1e-5)

    # bf16 activation/matmul path (v6e/v7x recommendation) -> looser tolerance
    lp_bf16 = jax.block_until_ready(
        evaluate_action_pallas(state, action, params,
                               compute_dtype=jnp.bfloat16))
    np.testing.assert_allclose(np.asarray(lp_bf16), np.asarray(ref),
                               rtol=1e-1, atol=5e-1)

    print("KERNEL_OK")
</pallas_src>

<mosaic_0001>
module attributes {stable_mosaic.version = 11 : i64} {
  func.func @gaussian_policy_kernel(%arg0: i32, %arg1: memref<8x128xf32, #tpu.memory_space<vmem>>, %arg2: memref<4x128xf32, #tpu.memory_space<vmem>>, %arg3: memref<32x8xf32, #tpu.memory_space<vmem>>, %arg4: memref<32x1xf32, #tpu.memory_space<vmem>>, %arg5: memref<32x32xf32, #tpu.memory_space<vmem>>, %arg6: memref<32x1xf32, #tpu.memory_space<vmem>>, %arg7: memref<4x32xf32, #tpu.memory_space<vmem>>, %arg8: memref<4x1xf32, #tpu.memory_space<vmem>>, %arg9: memref<1x4xf32, #tpu.memory_space<vmem>>, %arg10: memref<1x1xf32, #tpu.memory_space<smem>>, %arg11: memref<1x128xf32, #tpu.memory_space<vmem>>) attributes {dimension_semantics = [#tpu.dimension_semantics<parallel>], iteration_bounds = array<i64: 1>, scalar_prefetch = 0 : i64, scratch_operands = 0 : i64, tpu.core_type = #tpu.core_type<tc>, window_params = [{transform_indices = @transform_0, window_bounds = array<i64: 8, 128>}, {transform_indices = @transform_1, window_bounds = array<i64: 4, 128>}, {pipeline_mode = #tpu.pipeline_mode<synchronous>, transform_indices = @transform_2, window_bounds = array<i64: 32, 8>}, {pipeline_mode = #tpu.pipeline_mode<synchronous>, transform_indices = @transform_3, window_bounds = array<i64: 32, 1>}, {pipeline_mode = #tpu.pipeline_mode<synchronous>, transform_indices = @transform_4, window_bounds = array<i64: 32, 32>}, {pipeline_mode = #tpu.pipeline_mode<synchronous>, transform_indices = @transform_5, window_bounds = array<i64: 32, 1>}, {pipeline_mode = #tpu.pipeline_mode<synchronous>, transform_indices = @transform_6, window_bounds = array<i64: 4, 32>}, {pipeline_mode = #tpu.pipeline_mode<synchronous>, transform_indices = @transform_7, window_bounds = array<i64: 4, 1>}, {pipeline_mode = #tpu.pipeline_mode<synchronous>, transform_indices = @transform_8, window_bounds = array<i64: 1, 4>}, {transform_indices = @transform_9, window_bounds = array<i64: 1, 1>}, {transform_indices = @transform_10, window_bounds = array<i64: 1, 128>}]} {
    %c0 = arith.constant 0 : index
    %c0_0 = arith.constant 0 : index
    %0 = vector.load %arg1[%c0, %c0_0] : memref<8x128xf32, #tpu.memory_space<vmem>>, vector<8x128xf32>
    %c0_1 = arith.constant 0 : index
    %c0_2 = arith.constant 0 : index
    %1 = vector.load %arg3[%c0_1, %c0_2] : memref<32x8xf32, #tpu.memory_space<vmem>>, vector<32x8xf32>
    %cst = arith.constant dense<0.000000e+00> : vector<32x128xf32>
    %2 = tpu.matmul %1, %0, %cst {dimension_numbers = #tpu.dot_dimension_numbers<[1], [0], [0], [1], [0, 0, 1, 1], [], []>} : vector<32x8xf32>, vector<8x128xf32>, vector<32x128xf32> -> vector<32x128xf32>
    %c0_3 = arith.constant 0 : index
    %c0_4 = arith.constant 0 : index
    %3 = vector.load %arg4[%c0_3, %c0_4] : memref<32x1xf32, #tpu.memory_space<vmem>>, vector<32x1xf32>
    %4 = vector.broadcast %3 : vector<32x1xf32> to vector<32x128xf32>
    %5 = arith.addf %2, %4 : vector<32x128xf32>
    %6 = math.tanh %5 : vector<32x128xf32>
    %c0_5 = arith.constant 0 : index
    %c0_6 = arith.constant 0 : index
    %7 = vector.load %arg5[%c0_5, %c0_6] : memref<32x32xf32, #tpu.memory_space<vmem>>, vector<32x32xf32>
    %cst_7 = arith.constant dense<0.000000e+00> : vector<32x128xf32>
    %8 = tpu.matmul %7, %6, %cst_7 {dimension_numbers = #tpu.dot_dimension_numbers<[1], [0], [0], [1], [0, 0, 1, 1], [], []>} : vector<32x32xf32>, vector<32x128xf32>, vector<32x128xf32> -> vector<32x128xf32>
    %c0_8 = arith.constant 0 : index
    %c0_9 = arith.constant 0 : index
    %9 = vector.load %arg6[%c0_8, %c0_9] : memref<32x1xf32, #tpu.memory_space<vmem>>, vector<32x1xf32>
    %10 = vector.broadcast %9 : vector<32x1xf32> to vector<32x128xf32>
    %11 = arith.addf %8, %10 : vector<32x128xf32>
    %12 = math.tanh %11 : vector<32x128xf32>
    %c0_10 = arith.constant 0 : index
    %c0_11 = arith.constant 0 : index
    %13 = vector.load %arg7[%c0_10, %c0_11] : memref<4x32xf32, #tpu.memory_space<vmem>>, vector<4x32xf32>
    %cst_12 = arith.constant dense<0.000000e+00> : vector<4x128xf32>
    %14 = tpu.matmul %13, %12, %cst_12 {dimension_numbers = #tpu.dot_dimension_numbers<[1], [0], [0], [1], [0, 0, 1, 1], [], []>} : vector<4x32xf32>, vector<32x128xf32>, vector<4x128xf32> -> vector<4x128xf32>
    %c0_13 = arith.constant 0 : index
    %c0_14 = arith.constant 0 : index
    %15 = vector.load %arg8[%c0_13, %c0_14] : memref<4x1xf32, #tpu.memory_space<vmem>>, vector<4x1xf32>
    %16 = vector.broadcast %15 : vector<4x1xf32> to vector<4x128xf32>
    %17 = arith.addf %14, %16 : vector<4x128xf32>
    %18 = arith.negf %17 : vector<4x128xf32>
    %19 = math.exp %18 : vector<4x128xf32>
    %cst_15 = arith.constant 1.000000e+00 : f32
    %20 = vector.broadcast %cst_15 : f32 to vector<4x128xf32>
    %21 = arith.addf %20, %19 : vector<4x128xf32>
    %22 = arith.divf %20, %21 : vector<4x128xf32>
    %cst_16 = arith.constant 2.500000e+00 : f32
    %23 = vector.broadcast %cst_16 : f32 to vector<4x128xf32>
    %24 = arith.mulf %23, %22 : vector<4x128xf32>
    %c0_17 = arith.constant 0 : index
    %c0_18 = arith.constant 0 : index
    %25 = vector.load %arg2[%c0_17, %c0_18] : memref<4x128xf32, #tpu.memory_space<vmem>>, vector<4x128xf32>
    %26 = arith.subf %25, %24 : vector<4x128xf32>
    %27 = arith.mulf %26, %26 : vector<4x128xf32>
    %c0_19 = arith.constant 0 : index
    %c0_20 = arith.constant 0 : index
    %28 = vector.load %arg9[%c0_19, %c0_20] : memref<1x4xf32, #tpu.memory_space<vmem>>, vector<1x4xf32>
    %cst_21 = arith.constant dense<0.000000e+00> : vector<1x128xf32>
    %29 = tpu.matmul %28, %27, %cst_21 {dimension_numbers = #tpu.dot_dimension_numbers<[1], [0], [0], [1], [0, 0, 1, 1], [], []>} : vector<1x4xf32>, vector<4x128xf32>, vector<1x128xf32> -> vector<1x128xf32>
    %c0_22 = arith.constant 0 : index
    %c0_23 = arith.constant 0 : index
    %30 = memref.load %arg10[%c0_22, %c0_23] : memref<1x1xf32, #tpu.memory_space<smem>>
    %31 = vector.broadcast %30 : f32 to vector<1x128xf32>
    %32 = arith.addf %29, %31 : vector<1x128xf32>
    %c0_24 = arith.constant 0 : index
    %c0_25 = arith.constant 0 : index
    %33 = vector.load %arg11[%c0_24, %c0_25] : memref<1x128xf32, #tpu.memory_space<vmem>>, vector<1x128xf32>
    tpu.vector_store %arg11[%c0_24, %c0_25], %32 {strides = array<i32>} : memref<1x128xf32, #tpu.memory_space<vmem>>, vector<1x128xf32>,
    return
  }
  func.func @transform_0(%arg0: i32) -> (i32, i32) {
    %c0_i32 = arith.constant 0 : i32
    %c0_i32_0 = arith.constant 0 : i32
    return %c0_i32, %arg0 : i32, i32
  }
  func.func @transform_1(%arg0: i32) -> (i32, i32) {
    %c0_i32 = arith.constant 0 : i32
    %c0_i32_0 = arith.constant 0 : i32
    return %c0_i32, %arg0 : i32, i32
  }
  func.func @transform_2(%arg0: i32) -> (i32, i32) {
    %c0_i32 = arith.constant 0 : i32
    %c0_i32_0 = arith.constant 0 : i32
    %c0_i32_1 = arith.constant 0 : i32
    return %c0_i32, %c0_i32_0 : i32, i32
  }
  func.func @transform_3(%arg0: i32) -> (i32, i32) {
    %c0_i32 = arith.constant 0 : i32
    %c0_i32_0 = arith.constant 0 : i32
    %c0_i32_1 = arith.constant 0 : i32
    return %c0_i32, %c0_i32_0 : i32, i32
  }
  func.func @transform_4(%arg0: i32) -> (i32, i32) {
    %c0_i32 = arith.constant 0 : i32
    %c0_i32_0 = arith.constant 0 : i32
    %c0_i32_1 = arith.constant 0 : i32
    return %c0_i32, %c0_i32_0 : i32, i32
  }
  func.func @transform_5(%arg0: i32) -> (i32, i32) {
    %c0_i32 = arith.constant 0 : i32
    %c0_i32_0 = arith.constant 0 : i32
    %c0_i32_1 = arith.constant 0 : i32
    return %c0_i32, %c0_i32_0 : i32, i32
  }
  func.func @transform_6(%arg0: i32) -> (i32, i32) {
    %c0_i32 = arith.constant 0 : i32
    %c0_i32_0 = arith.constant 0 : i32
    %c0_i32_1 = arith.constant 0 : i32
    return %c0_i32, %c0_i32_0 : i32, i32
  }
  func.func @transform_7(%arg0: i32) -> (i32, i32) {
    %c0_i32 = arith.constant 0 : i32
    %c0_i32_0 = arith.constant 0 : i32
    %c0_i32_1 = arith.constant 0 : i32
    return %c0_i32, %c0_i32_0 : i32, i32
  }
  func.func @transform_8(%arg0: i32) -> (i32, i32) {
    %c0_i32 = arith.constant 0 : i32
    %c0_i32_0 = arith.constant 0 : i32
    %c0_i32_1 = arith.constant 0 : i32
    return %c0_i32, %c0_i32_0 : i32, i32
  }
  func.func @transform_9(%arg0: i32) -> (i32, i32) {
    %c0_i32 = arith.constant 0 : i32
    %c0_i32_0 = arith.constant 0 : i32
    %c0_i32_1 = arith.constant 0 : i32
    return %c0_i32, %c0_i32_0 : i32, i32
  }
  func.func @transform_10(%arg0: i32) -> (i32, i32) {
    %c0_i32 = arith.constant 0 : i32
    %c0_i32_0 = arith.constant 0 : i32
    return %c0_i32, %arg0 : i32, i32
  }
}

</mosaic_0001>

<bundles_post_ra>
// kernel: tpu_custom_call.1
= control target key start
LH: loop header
LB: loop body
LE: loop exit
PB: predicated region body
PF: predicated region fallthrough
CT: control target
= control target key end

     0   :  { %vm66_vm0 = vcmask 64512   ;;  %v619_v5 = vmov 0   ;;  %s768_s0 = inlined_call_operand.vmem [shape: f32[8,20], index: 0, kind: input, shape index: {}]   ;;  %s769_s1 = inlined_call_operand.vmem [shape: f32[4,20], index: 1, kind: input, shape index: {}]   ;;  %s770_s2 = inlined_call_operand.vmem [shape: f32[32,8], index: 2, kind: input, shape index: {}]   ;;  %s771_s3 = inlined_call_operand.vmem [shape: f32[32,1], index: 3, kind: input, shape index: {}]   ;;  %s772_s4 = inlined_call_operand.vmem [shape: f32[32,32], index: 4, kind: input, shape index: {}]   ;;  %s773_s5 = inlined_call_operand.vmem [shape: f32[32,1], index: 5, kind: input, shape index: {}]   ;;  %s774_s6 = inlined_call_operand.vmem [shape: f32[4,32], index: 6, kind: input, shape index: {}]   ;;  %s775_s7 = inlined_call_operand.vmem [shape: f32[4,1], index: 7, kind: input, shape index: {}]   ;;  %s776_s8 = inlined_call_operand.vmem [shape: f32[1,4], index: 8, kind: input, shape index: {}]   ;;  %s777_s9 = inlined_call_operand.<no memory space> [shape: f32[1,1], index: 9, kind: input, shape index: {}]   ;;  %s778_s10 = inlined_call_operand.hbm [shape: f32[1,128], index: 10, kind: output, shape index: {}]  }
   0x1   :  { %v37_v0 = vld [vmem:[%s768_s0] sm:$0xff]  ;;  %v39_v2 = vld [vmem:[%s770_s2 + $0x8] sm:$0xff]  ;;  %v40_v3 = vld [vmem:[%s770_s2 + $0x10] sm:$0xff]  ;;  %573 = vset.pattern.permute.xlu0 %v619_v5  ;;  %574 = vset.pattern.permute.xlu1 %v619_v5 }
   0x2   :  { %v38_v1 = vld [vmem:[%s770_s2] sm:$0xff]  ;;  %516 = vmatprep.subr.mxu0 %v37_v0  ;;  %v44_v6 = vld [vmem:[%s771_s3 + $0x10] sm:$0xff]  ;;  %v41_v7 = vld [vmem:[%s770_s2 + $0x18] sm:$0xff] }
   0x3   :  { %518 = vmatprep.mubr.msk.f32.mxu0 %vm66_vm0, %v38_v1  ;;  %v42_v4 = vld [vmem:[%s771_s3] sm:$0xff]  ;;  %517 = vmatpush3.msra.mxu0 %v37_v0  ;;  %v43_v8 = vld [vmem:[%s771_s3 + $0x8] sm:$0xff] }
   0x4   :  { %519 = vmatmul.mubr.msk.f32.vlgmr.msra.gmra.mrb[0].mxu0 %vm66_vm0, %v39_v2  ;;  %48 = vperm.xlu0 %573, %v42_v4  }
   0x5   :  { %521 = vmatprep.mubr.msk.f32.mxu0 %vm66_vm0, %v40_v3 }
   0x6   :  { %16 = vsyncpa [#allocation4], 0  ;;  %58 = vperm.xlu1 %574, %v44_v6   ;;  %v45_v9 = vld [vmem:[%s771_s3 + $0x18] sm:$0xff]  ;;  %v172_v10 = vld [vmem:[%s773_s5] sm:$0xff]  ;;  %vm196_vm1 = vcmask 261120   ;;  %v620_v37 = vmov 0.0|0.0  }
   0x7   :  { %v173_v11 = vld [vmem:[%s773_s5 + $0x8] sm:$0xff]  ;;  %v174_v12 = vld [vmem:[%s773_s5 + $0x10] sm:$0xff]  ;;  %v175_v13 = vld [vmem:[%s773_s5 + $0x18] sm:$0xff]  ;;  %562 = vmatprep.subr.bf16.mxu0 %v620_v37  ;;  %vm621_vm2 = vmmov 0   ;;  %v622_v38 = vmov 0.0   ;;  %vm395_vm3 = vcmask 1043456  }
   0x8   :  { %522 = vmatmul.mubr.msk.f32.gmra.mrb[2].mxu0 %vm66_vm0, %v41_v7  ;;  %53 = vperm.xlu0 %573, %v43_v8   ;;  %v299_v14 = vld [vmem:[%s775_s7] sm:$0xf]  ;;  %v169_v34 = vld [vmem:[%s772_s4 + $0x8] sm:$0xff]  ;;  %v170_v35 = vld [vmem:[%s772_s4 + $0x10] sm:$0xff]  ;;  %vm391_vm4 = vcmask 31744   ;;  %v390_v7 = vstv %s777_s9  ;;  %s623_s29 = smov [#allocation3]  }
   0x9   :  { %v168_v15 = vld [vmem:[%s772_s4] sm:$0xff]  ;;  %v171_v36 = vld [vmem:[%s772_s4 + $0x18] sm:$0xff]  ;;  %546 = vmatprep.mubr.msk.f32.mxu0 %vm621_vm2, %v622_v38  ;;  %s476_s30 = sshll.u32 %s623_s29, 4  ;;  %s477_s30 = int_to_ptr.vmem [resolvable:$true] %s476_s30 }
   0xa   :  { %63 = vperm.xlu1 %574, %v45_v9   ;;  %532 = vmatprep.mubr.msk.f32.mxu1 %vm196_vm1, %v168_v15  ;;  %v298_v57 = vld [vmem:[%s774_s6] sm:$0xf]  ;;  %s599_s11 = scalar_lea.vmem %s477_s30, 32  ;;  %p600_p1 = scmp.lt.s32.totalorder %s477_s30, %s477_s30 }
   0xb   :  { %v385_v2 = vld [vmem:[%s769_s1] sm:$0xf]  ;;  %s595_s1 = scalar_lea.vmem %s477_s30, 16 }
   0xc   :  { %178 = vperm.xlu0 %573, %v172_v10   ;;  %v388_v6 = vld [vmem:[%s776_s8] sm:$0x1]  ;;  %p596_p0 = scmp.ne.s32.totalorder %s477_s30, %s595_s1  ;;  %p601_p2 = scmp.lt.s32.totalorder %s599_s11, %s595_s1 }
   0xe   :  { %183 = vperm.xlu1 %574, %v173_v11   ;;  %p602_p3 = por %p601_p2, %p600_p1 }
  0x10   :  { %188 = vperm.xlu0 %573, %v174_v12   ;;  %p603_p4 = pnand %p602_p3, %p596_p0 }
  0x12   :  { %193 = vperm.xlu1 %574, %v175_v13  }
  0x14   :  { %302 = vperm.xlu0 %573, %v299_v14  }
  0x83   :  { %v49_v16 = vpop.permute.xlu0 %48 }
  0x85   :  { %v59_v17 = vpop.permute.xlu1 %58 }
  0x87   :  { %v54_v18 = vpop.permute.xlu0 %53 }
  0x89   :  { %v64_v23 = vpop.permute.xlu1 %63 }
  0x8b   :  { %v179_v40 = vpop.permute.xlu0 %178 }
  0x8d   :  { %v184_v39 = vpop.permute.xlu1 %183 }
  0x8f   :  { %v189_v47 = vpop.permute.xlu0 %188 }
  0x91   :  { %v194_v45 = vpop.permute.xlu1 %193 }
  0x93   :  { %v303_v58 = vpop.permute.xlu0 %302 }
  0xd7   :  { %v520_v19 = vpop.f32.mrb[0].mxu0 }
  0xd8   :  { %v151_v20 = vadd.f32 %v520_v19, %v54_v18  ;;  %v145_v21 = vpop.f32.mrb[1].mxu0 }
  0xd9   :  { %v146_v22 = vadd.f32 %v145_v21, %v49_v16 }
  0xda   :  { %575 = vtanh.f32 %v151_v20 }
  0xdb   :  { %577 = vtanh.f32 %v146_v22  ;;  %v523_v24 = vpop.f32.mrb[2].mxu0 }
  0xdc   :  { %v161_v25 = vadd.f32 %v523_v24, %v64_v23  ;;  %v155_v26 = vpop.f32.mrb[3].mxu0 }
  0xdd   :  { %v156_v27 = vadd.f32 %v155_v26, %v59_v17 }
  0xde   :  { %579 = vtanh.f32 %v161_v25 }
  0xdf   :  { %581 = vtanh.f32 %v156_v27 }
  0xe4   :  { %v576_v28 = vpop.eup %575 }
  0xe5   :  { %v578_v29 = vpop.eup %577 }
  0xe6   :  { %v554_v30 = vpack.c.bf16 %v576_v28, %v578_v29 }
  0xe8   :  { %v580_v31 = vpop.eup %579  ;;  %555 = vmatprep.subr.bf16.mxu1 %v554_v30 }
  0xe9   :  { %v582_v32 = vpop.eup %581  ;;  %557 = vmatpush3.bf16.msra.mxu1 %v554_v30 }
  0xea   :  { %v558_v33 = vpack.c.bf16 %v580_v31, %v582_v32 }
  0xec   :  { %559 = vmatprep.subr.bf16.mxu1 %v558_v33 }
  0xed   :  { %561 = vmatpush3.bf16.msra.mxu1 %v558_v33 }
  0xf0   :  { %533 = vmatmul.mubr.msk.f32.vlgmr.msra.gmra.mrb[0].mxu1 %vm196_vm1, %v169_v34 }
  0xf1   :  { %535 = vmatprep.mubr.msk.f32.mxu1 %vm196_vm1, %v170_v35 }
  0xf4   :  { %536 = vmatmul.mubr.msk.f32.gmra.mrb[2].mxu1 %vm196_vm1, %v171_v36 }
 0x1c3   :  { %v534_v41 = vpop.f32.mrb[0].mxu1 }
 0x1c4   :  { %v281_v42 = vadd.f32 %v534_v41, %v184_v39  ;;  %v275_v43 = vpop.f32.mrb[1].mxu1 }
 0x1c5   :  { %v276_v44 = vadd.f32 %v275_v43, %v179_v40 }
 0x1c6   :  { %583 = vtanh.f32 %v281_v42 }
 0x1c7   :  { %585 = vtanh.f32 %v276_v44  ;;  %v537_v46 = vpop.f32.mrb[2].mxu1 }
 0x1c8   :  { %v291_v48 = vadd.f32 %v537_v46, %v194_v45  ;;  %v285_v49 = vpop.f32.mrb[3].mxu1 }
 0x1c9   :  { %v286_v50 = vadd.f32 %v285_v49, %v189_v47 }
 0x1ca   :  { %587 = vtanh.f32 %v291_v48 }
 0x1cb   :  { %589 = vtanh.f32 %v286_v50 }
 0x1d0   :  { %v584_v51 = vpop.eup %583 }
 0x1d1   :  { %v586_v52 = vpop.eup %585 }
 0x1d2   :  { %v563_v53 = vpack.c.bf16 %v584_v51, %v586_v52 }
 0x1d4   :  { %v588_v54 = vpop.eup %587  ;;  %564 = vmatpush3.bf16.msra.mxu0 %v563_v53 }
 0x1d5   :  { %v590_v55 = vpop.eup %589  ;;  %565 = vmatprep.subr.bf16.mxu0 %v620_v37 }
 0x1d6   :  { %v566_v56 = vpack.c.bf16 %v588_v54, %v590_v55 }
 0x1d8   :  { %567 = vmatpush3.bf16.msra.mxu0 %v566_v56 }
 0x1d9   :  { %549 = vmatprep.subr.mxu0 %v622_v38 }
 0x1db   :  { %547 = vmatmul.mubr.msk.f32.vlgmr.msra.gmra.mrb[4].mxu0 %vm196_vm1, %v298_v57 }
 0x1dc   :  { %551 = vmatprep.mubr.msk.f32.mxu0 %vm621_vm2, %v622_v38 }
 0x2ae   :  { %v374_v59 = vpop.f32.mrb[4].mxu0 }
 0x2af   :  { %v375_v60 = vadd.f32 %v374_v59, %v303_v58  ;;  %v548_v61 = vpop.f32.mrb[5].mxu0 }
 0x2b1   :  { %v493_v62 = vmul.f32 -1.442695, %v375_v60 }
 0x2b3   :  { %591 = vpow2.f32 %v493_v62 }
 0x2bd   :  { %v592_v63 = vpop.eup %591 }
 0x2be   :  { %v381_v0 = vadd.f32 1.0, %v592_v63 }
 0x2c0   :  { %593 = vrcp.f32 %v381_v0 }
 0x2ca   :  { %v594_v1 = vpop.eup %593 }
 0x2cb   :  { %v384_v3 = vmul.f32 2.5, %v594_v1 }
 0x2cd   :  { %v386_v4 = vsub.f32 %v385_v2, %v384_v3 }
 0x2cf   :  { %v387_v5 = vmul.f32 %v386_v4, %v386_v4 }
 0x2d1   :  { %550 = vmatpush3.msk.msra.mxu0 %vm395_vm3, %v387_v5 }
 0x2d2   :  { %552 = vmatmul.mubr.msk.f32.vlgmr.msra.gmra.mrb[6].mxu0 %vm391_vm4, %v388_v6 }
 0x3a5   :  { %v465_v8 = vpop.f32.mrb[6].mxu0 }
 0x3a6   :  { %v466_v9 = vadd.f32 %v465_v8, %v390_v7  ;;  %v553_v10 = vpop.f32.mrb[7].mxu0 }
 0x3a8   :  { %469 = vst [vmem:[#allocation3] sm:$0x1] %v466_v9 }
 0x3a9   :  { %606 = shalt.err (!%p603_p4)
}
 0x3aa   :  { %s607_s12 = scalar_lea.hbm %s778_s10, 16 }
 0x3ab   :  { %p608_p5 = scmp.ne.s32.totalorder %s778_s10, %s607_s12  ;;  %p611_p6 = scmp.lt.u32.totalorder %s607_s12, %s778_s10 }
 0x3ad   :  { %p613_p7 = pnand %p611_p6, %p608_p5 }
 0x3af   :  { %616 = shalt.err (!%p613_p7)
}
 0x3b0   :  { %479 = dma.vmem_to_hbm [thread:$0]  %s477_s30, 16, %s778_s10, [#allocation4]  }
 0x3b1   :  { %617 = dma.done.wait [#allocation4], 16  }
 0x3b2   :  { %618 = vsyncadd [#allocation4], 4294967280 }
 0x3b3   :  { %483 = vsyncpa [#allocation4], 1 }

</bundles_post_ra>
